<compile_context>
chip_gen: v6e
topology: v6e:2x2x1
jax: 0.10.0
libtpu: 0.0.40
codegen_flags: <defaults>
</compile_context>

<pallas_src>
import jax
import jax.numpy as jnp
from jax import lax
from jax.experimental import pallas as pl
from jax.experimental.pallas import tpu as pltpu

# ----- scaled-down config (PyTorch originals in comments) -----
N_FINE = 8                      # PyTorch: 50
N_VARS = 1
D = N_FINE * N_FINE * N_VARS    # input_dim - 1        (PyTorch: 2500)
INPUT_DIM = D + 1               # PyTorch: 2501
HIDDEN = 32                     # PyTorch: int(2048 * 0.23) = 471
MID_CH = 4                      # PyTorch: 512
BS = 2
T_STEPS = 4


# ---------------------------------------------------------------------------
# Fused Pallas kernel: full explicit-Euler rollout of CSNeuralODE.
# ---------------------------------------------------------------------------
def _csnode_kernel(t_ref,                                   # SMEM (T,)
                   y0_ref,                                  # VMEM (BS, D)
                   w1t_ref, w1y_ref, b1_ref,                # VMEM MLP layer 1 (t row split off)
                   w2_ref, b2_ref,                          # VMEM MLP layer 2
                   w3_ref, b3_ref,                          # VMEM MLP layer 3 (pre-sliced to D cols)
                   ca_ref, cb1_ref,                         # VMEM conv1 as matrix: (D, MID*D), (1, MID*D)
                   cbm_ref, cb2_ref,                        # VMEM conv2 as matrix: (MID*D, D), (1, D)
                   out_ref):                                # VMEM (T, BS, D)
    dt = t_ref[1] - t_ref[0]

    # Hoist every weight out of the (trace-time unrolled) time loop.
    w1t = w1t_ref[...]
    w1y = w1y_ref[...]
    b1 = b1_ref[...]
    w2 = w2_ref[...]
    b2 = b2_ref[...]
    w3 = w3_ref[...]
    b3 = b3_ref[...]
    ca = ca_ref[...]
    cb1 = cb1_ref[...]
    cbm = cbm_ref[...]
    cb2 = cb2_ref[...]

    y = y0_ref[...]                                         # (BS, D)
    gu = y
    out_ref[0] = y

    # T_STEPS is small and static -> unrolled loop, static store indices.
    for i in range(T_STEPS - 1):
        t_i = t_ref[i]

        # gfunc = TwoConvLayer: conv1 (1->MID_CH) then conv2 (MID_CH->1), each as
        # one matmul against its precomputed shift-and-weight matrix.
        h = jnp.dot(gu, ca, preferred_element_type=jnp.float32) + cb1       # (BS, MID*D)
        gu = jnp.dot(h, cbm, preferred_element_type=jnp.float32) + cb2      # (BS, D)

        # ODEFunc MLP; the time column is folded in without materializing cat([t, y]).
        z1 = jnp.dot(y, w1y, preferred_element_type=jnp.float32) + t_i * w1t + b1
        h1 = jnp.tanh(z1)
        z2 = jnp.dot(h1, w2, preferred_element_type=jnp.float32) + b2
        # softplus(x) = max(x, 0) + log(1 + exp(-|x|))   (numerically stable)
        h2 = jnp.maximum(z2, 0.0) + jnp.log(1.0 + jnp.exp(-jnp.abs(z2)))
        f = jnp.dot(h2, w3, preferred_element_type=jnp.float32) + b3        # (BS, D)

        # Euler update with control input.
        y = y + (f + gu) * dt
        out_ref[i + 1] = y


# ---------------------------------------------------------------------------
# Wrapper: parameter prep (conv -> matrix form, concat elimination) + pallas_call
# ---------------------------------------------------------------------------
def _shift_matrices(n):
    """(3, 3, n*n, n*n): (x_flat @ S[a, b])[i*n + j] == xpad[i + a, j + b] (zero pad 1)."""
    rows = []
    for di in (-1, 0, 1):
        cols = []
        for dj in (-1, 0, 1):
            cols.append(jnp.kron(jnp.eye(n, k=-di, dtype=jnp.float32),
                                 jnp.eye(n, k=-dj, dtype=jnp.float32)))
        rows.append(jnp.stack(cols))
    return jnp.stack(rows)


@jax.jit
def csneural_ode_forward(y0, t, p):
    # Exact matrix form of the TwoConvLayer (built once per call, tiny).
    M = _shift_matrices(N_FINE)                                            # (3, 3, D, D)
    ca = jnp.einsum("mab,abqk->qmk", p["cw1"][:, 0], M).reshape(D, MID_CH * D)
    cb1 = jnp.repeat(p["cb1"], D)[None, :]                                 # (1, MID*D)
    cbm = jnp.einsum("mab,abqk->mqk", p["cw2"][0], M).reshape(MID_CH * D, D)
    cb2 = jnp.full((1, D), p["cb2"][0], jnp.float32)                       # (1, D)

    # Split W1's time row (kills the cat([t, y]) concat); slicing W3/b3 columns is
    # exactly equivalent to slicing net(...)[:, :input_dim-1].
    w1t = p["w1"][0:1, :]
    w1y = p["w1"][1:, :]
    w3 = p["w3"][:, :D]
    b3 = p["b3"][:, :D]

    vmem = pl.BlockSpec(memory_space=pltpu.MemorySpace.VMEM)
    smem = pl.BlockSpec(memory_space=pltpu.MemorySpace.SMEM)

    ys = pl.pallas_call(
        _csnode_kernel,
        out_shape=jax.ShapeDtypeStruct((T_STEPS, BS, D), jnp.float32),
        in_specs=[smem] + [vmem] * 12,
        out_specs=vmem,
    )(t, y0, w1t, w1y, p["b1"], p["w2"], p["b2"], w3, b3, ca, cb1, cbm, cb2)

    # torch.stack(ys) -> (T, BS, D); out.view(-1, T, input_dim-1) is a raw view
    # (NOT a transpose) -- the same layout quirk is reproduced faithfully here.
    return ys.reshape(-1, T_STEPS, D)


# ---------------------------------------------------------------------------
# Parameters
# ---------------------------------------------------------------------------
def init_params(key):
    ks = jax.random.split(key, 10)
    s = 0.05
    return {
        # ODEFunc net (weights stored (in, out) so the kernel does x @ W + b)
        "w1": jax.random.normal(ks[0], (INPUT_DIM, HIDDEN), jnp.float32) * s,
        "b1": jax.random.normal(ks[1], (1, HIDDEN), jnp.float32) * s,
        "w2": jax.random.normal(ks[2], (HIDDEN, HIDDEN), jnp.float32) * s,
        "b2": jax.random.normal(ks[3], (1, HIDDEN), jnp.float32) * s,
        "w3": jax.random.normal(ks[4], (HIDDEN, INPUT_DIM), jnp.float32) * s,
        "b3": jax.random.normal(ks[5], (1, INPUT_DIM), jnp.float32) * s,
        # TwoConvLayer (PyTorch Conv2d weight layout: (out_ch, in_ch, 3, 3))
        "cw1": jax.random.normal(ks[6], (MID_CH, 1, 3, 3), jnp.float32) * s,
        "cb1": jax.random.normal(ks[7], (MID_CH,), jnp.float32) * s,
        "cw2": jax.random.normal(ks[8], (1, MID_CH, 3, 3), jnp.float32) * s,
        "cb2": jax.random.normal(ks[9], (1,), jnp.float32) * s,
    }


# ---------------------------------------------------------------------------
# Pure-JAX reference (mirrors the PyTorch module + basic_euler_ode_solver)
# ---------------------------------------------------------------------------
def _reference_forward(y0, t, p):
    hp = lax.Precision.HIGHEST
    dt = t[1] - t[0]

    def mlp(t_i, y):
        tv = jnp.ones((y.shape[0], 1), jnp.float32) * t_i
        ty = jnp.concatenate([tv, y], axis=1)
        h1 = jnp.tanh(jnp.dot(ty, p["w1"], precision=hp) + p["b1"])
        h2 = jax.nn.softplus(jnp.dot(h1, p["w2"], precision=hp) + p["b2"])
        return (jnp.dot(h2, p["w3"], precision=hp) + p["b3"])[:, :D]

    def conv(x):
        img = x.reshape(BS, 1, N_FINE, N_FINE)
        y1 = lax.conv_general_dilated(img, p["cw1"], (1, 1), ((1, 1), (1, 1)),
                                      dimension_numbers=("NCHW", "OIHW", "NCHW"),
                                      precision=hp) + p["cb1"][None, :, None, None]
        y2 = lax.conv_general_dilated(y1, p["cw2"], (1, 1), ((1, 1), (1, 1)),
                                      dimension_numbers=("NCHW", "OIHW", "NCHW"),
                                      precision=hp) + p["cb2"][None, :, None, None]
        return y2.reshape(BS, D)

    y, gu, ys = y0, y0, [y0]
    for i in range(t.shape[0] - 1):
        gu = conv(gu)
        y = y + (mlp(t[i], y) + gu) * dt
        ys.append(y)
    return jnp.stack(ys).reshape(-1, t.shape[0], D)


if __name__ == "__main__":
    key = jax.random.PRNGKey(0)
    pkey, dkey = jax.random.split(key)
    params = init_params(pkey)
    y0 = jax.random.normal(dkey, (BS, D), jnp.float32)
    t = jnp.linspace(0.0, 1.0, T_STEPS).astype(jnp.float32)

    out = csneural_ode_forward(y0, t, params)
    out = jax.block_until_ready(out)
    assert out.shape == (BS, T_STEPS, D), out.shape
    assert bool(jnp.all(jnp.isfinite(out)))

    ref = _reference_forward(y0, t, params)
    err = float(jnp.max(jnp.abs(out - ref)))
    assert err < 1e-2, f"max abs diff vs reference: {err}"

    print("KERNEL_OK")
</pallas_src>

<mosaic_0001>
module attributes {stable_mosaic.version = 11 : i64} {
  func.func @_csnode_kernel(%arg0: memref<4xf32, #tpu.memory_space<smem>>, %arg1: memref<2x64xf32, #tpu.memory_space<vmem>>, %arg2: memref<1x32xf32, #tpu.memory_space<vmem>>, %arg3: memref<64x32xf32, #tpu.memory_space<vmem>>, %arg4: memref<1x32xf32, #tpu.memory_space<vmem>>, %arg5: memref<32x32xf32, #tpu.memory_space<vmem>>, %arg6: memref<1x32xf32, #tpu.memory_space<vmem>>, %arg7: memref<32x64xf32, #tpu.memory_space<vmem>>, %arg8: memref<1x64xf32, #tpu.memory_space<vmem>>, %arg9: memref<64x256xf32, #tpu.memory_space<vmem>>, %arg10: memref<1x256xf32, #tpu.memory_space<vmem>>, %arg11: memref<256x64xf32, #tpu.memory_space<vmem>>, %arg12: memref<1x64xf32, #tpu.memory_space<vmem>>, %arg13: memref<4x2x64xf32, #tpu.memory_space<vmem>>) attributes {dimension_semantics = [], scalar_prefetch = 0 : i64, scratch_operands = 0 : i64, tpu.core_type = #tpu.core_type<tc>} {
    %c1 = arith.constant 1 : index
    %0 = memref.load %arg0[%c1] : memref<4xf32, #tpu.memory_space<smem>>
    %c0 = arith.constant 0 : index
    %1 = memref.load %arg0[%c0] : memref<4xf32, #tpu.memory_space<smem>>
    %2 = arith.subf %0, %1 : f32
    %c0_0 = arith.constant 0 : index
    %c0_1 = arith.constant 0 : index
    %3 = vector.load %arg2[%c0_0, %c0_1] : memref<1x32xf32, #tpu.memory_space<vmem>>, vector<1x32xf32>
    %c0_2 = arith.constant 0 : index
    %c0_3 = arith.constant 0 : index
    %4 = vector.load %arg3[%c0_2, %c0_3] : memref<64x32xf32, #tpu.memory_space<vmem>>, vector<64x32xf32>
    %c0_4 = arith.constant 0 : index
    %c0_5 = arith.constant 0 : index
    %5 = vector.load %arg4[%c0_4, %c0_5] : memref<1x32xf32, #tpu.memory_space<vmem>>, vector<1x32xf32>
    %c0_6 = arith.constant 0 : index
    %c0_7 = arith.constant 0 : index
    %6 = vector.load %arg5[%c0_6, %c0_7] : memref<32x32xf32, #tpu.memory_space<vmem>>, vector<32x32xf32>
    %c0_8 = arith.constant 0 : index
    %c0_9 = arith.constant 0 : index
    %7 = vector.load %arg6[%c0_8, %c0_9] : memref<1x32xf32, #tpu.memory_space<vmem>>, vector<1x32xf32>
    %c0_10 = arith.constant 0 : index
    %c0_11 = arith.constant 0 : index
    %8 = vector.load %arg7[%c0_10, %c0_11] : memref<32x64xf32, #tpu.memory_space<vmem>>, vector<32x64xf32>
    %c0_12 = arith.constant 0 : index
    %c0_13 = arith.constant 0 : index
    %9 = vector.load %arg8[%c0_12, %c0_13] : memref<1x64xf32, #tpu.memory_space<vmem>>, vector<1x64xf32>
    %c0_14 = arith.constant 0 : index
    %c0_15 = arith.constant 0 : index
    %10 = vector.load %arg9[%c0_14, %c0_15] : memref<64x256xf32, #tpu.memory_space<vmem>>, vector<64x256xf32>
    %c0_16 = arith.constant 0 : index
    %c0_17 = arith.constant 0 : index
    %11 = vector.load %arg10[%c0_16, %c0_17] : memref<1x256xf32, #tpu.memory_space<vmem>>, vector<1x256xf32>
    %c0_18 = arith.constant 0 : index
    %c0_19 = arith.constant 0 : index
    %12 = vector.load %arg11[%c0_18, %c0_19] : memref<256x64xf32, #tpu.memory_space<vmem>>, vector<256x64xf32>
    %c0_20 = arith.constant 0 : index
    %c0_21 = arith.constant 0 : index
    %13 = vector.load %arg12[%c0_20, %c0_21] : memref<1x64xf32, #tpu.memory_space<vmem>>, vector<1x64xf32>
    %c0_22 = arith.constant 0 : index
    %c0_23 = arith.constant 0 : index
    %14 = vector.load %arg1[%c0_22, %c0_23] : memref<2x64xf32, #tpu.memory_space<vmem>>, vector<2x64xf32>
    %c0_24 = arith.constant 0 : index
    %c0_25 = arith.constant 0 : index
    %c0_26 = arith.constant 0 : index
    %15 = vector.load %arg13[%c0_24, %c0_25, %c0_26] : memref<4x2x64xf32, #tpu.memory_space<vmem>>, vector<1x2x64xf32>
    %16 = vector.shape_cast %15 : vector<1x2x64xf32> to vector<2x64xf32>
    %17 = vector.shape_cast %14 : vector<2x64xf32> to vector<1x2x64xf32>
    tpu.vector_store %arg13[%c0_24, %c0_25, %c0_26], %17 {strides = array<i32>} : memref<4x2x64xf32, #tpu.memory_space<vmem>>, vector<1x2x64xf32>,
    %c0_27 = arith.constant 0 : index
    %18 = memref.load %arg0[%c0_27] : memref<4xf32, #tpu.memory_space<smem>>
    %cst = arith.constant dense<0.000000e+00> : vector<2x256xf32>
    %19 = tpu.matmul %14, %10, %cst {dimension_numbers = #tpu.dot_dimension_numbers<[1], [0], [0], [1], [0, 0, 1, 1], [], []>} : vector<2x64xf32>, vector<64x256xf32>, vector<2x256xf32> -> vector<2x256xf32>
    %20 = vector.broadcast %11 : vector<1x256xf32> to vector<2x256xf32>
    %21 = arith.addf %19, %20 : vector<2x256xf32>
    %cst_28 = arith.constant dense<0.000000e+00> : vector<2x64xf32>
    %22 = tpu.matmul %21, %12, %cst_28 {dimension_numbers = #tpu.dot_dimension_numbers<[1], [0], [0], [1], [0, 0, 1, 1], [], []>} : vector<2x256xf32>, vector<256x64xf32>, vector<2x64xf32> -> vector<2x64xf32>
    %23 = vector.broadcast %13 : vector<1x64xf32> to vector<2x64xf32>
    %24 = arith.addf %22, %23 : vector<2x64xf32>
    %cst_29 = arith.constant dense<0.000000e+00> : vector<2x32xf32>
    %25 = tpu.matmul %14, %4, %cst_29 {dimension_numbers = #tpu.dot_dimension_numbers<[1], [0], [0], [1], [0, 0, 1, 1], [], []>} : vector<2x64xf32>, vector<64x32xf32>, vector<2x32xf32> -> vector<2x32xf32>
    %26 = vector.broadcast %18 : f32 to vector<1x32xf32>
    %27 = arith.mulf %26, %3 : vector<1x32xf32>
    %28 = vector.broadcast %27 : vector<1x32xf32> to vector<2x32xf32>
    %29 = arith.addf %25, %28 : vector<2x32xf32>
    %30 = vector.broadcast %5 : vector<1x32xf32> to vector<2x32xf32>
    %31 = arith.addf %29, %30 : vector<2x32xf32>
    %32 = math.tanh %31 : vector<2x32xf32>
    %cst_30 = arith.constant dense<0.000000e+00> : vector<2x32xf32>
    %33 = tpu.matmul %32, %6, %cst_30 {dimension_numbers = #tpu.dot_dimension_numbers<[1], [0], [0], [1], [0, 0, 1, 1], [], []>} : vector<2x32xf32>, vector<32x32xf32>, vector<2x32xf32> -> vector<2x32xf32>
    %34 = vector.broadcast %7 : vector<1x32xf32> to vector<2x32xf32>
    %35 = arith.addf %33, %34 : vector<2x32xf32>
    %cst_31 = arith.constant 0.000000e+00 : f32
    %36 = vector.broadcast %cst_31 : f32 to vector<2x32xf32>
    %37 = arith.maximumf %35, %36 : vector<2x32xf32>
    %38 = math.absf %35 : vector<2x32xf32>
    %cst_32 = arith.constant 0.000000e+00 : f32
    %39 = vector.broadcast %cst_32 : f32 to vector<2x32xf32>
    %40 = arith.subf %39, %38 : vector<2x32xf32>
    %41 = math.exp %40 : vector<2x32xf32>
    %cst_33 = arith.constant 1.000000e+00 : f32
    %42 = vector.broadcast %cst_33 : f32 to vector<2x32xf32>
    %43 = arith.addf %42, %41 : vector<2x32xf32>
    %44 = math.log %43 : vector<2x32xf32>
    %45 = arith.addf %37, %44 : vector<2x32xf32>
    %cst_34 = arith.constant dense<0.000000e+00> : vector<2x64xf32>
    %46 = tpu.matmul %45, %8, %cst_34 {dimension_numbers = #tpu.dot_dimension_numbers<[1], [0], [0], [1], [0, 0, 1, 1], [], []>} : vector<2x32xf32>, vector<32x64xf32>, vector<2x64xf32> -> vector<2x64xf32>
    %47 = vector.broadcast %9 : vector<1x64xf32> to vector<2x64xf32>
    %48 = arith.addf %46, %47 : vector<2x64xf32>
    %49 = arith.addf %48, %24 : vector<2x64xf32>
    %50 = vector.broadcast %2 : f32 to vector<2x64xf32>
    %51 = arith.mulf %49, %50 : vector<2x64xf32>
    %52 = arith.addf %14, %51 : vector<2x64xf32>
    %c1_35 = arith.constant 1 : index
    %c0_36 = arith.constant 0 : index
    %c0_37 = arith.constant 0 : index
    %53 = vector.load %arg13[%c1_35, %c0_36, %c0_37] : memref<4x2x64xf32, #tpu.memory_space<vmem>>, vector<1x2x64xf32>
    %54 = vector.shape_cast %53 : vector<1x2x64xf32> to vector<2x64xf32>
    %55 = vector.shape_cast %52 : vector<2x64xf32> to vector<1x2x64xf32>
    tpu.vector_store %arg13[%c1_35, %c0_36, %c0_37], %55 {strides = array<i32>} : memref<4x2x64xf32, #tpu.memory_space<vmem>>, vector<1x2x64xf32>,
    %c1_38 = arith.constant 1 : index
    %56 = memref.load %arg0[%c1_38] : memref<4xf32, #tpu.memory_space<smem>>
    %cst_39 = arith.constant dense<0.000000e+00> : vector<2x256xf32>
    %57 = tpu.matmul %24, %10, %cst_39 {dimension_numbers = #tpu.dot_dimension_numbers<[1], [0], [0], [1], [0, 0, 1, 1], [], []>} : vector<2x64xf32>, vector<64x256xf32>, vector<2x256xf32> -> vector<2x256xf32>
    %58 = vector.broadcast %11 : vector<1x256xf32> to vector<2x256xf32>
    %59 = arith.addf %57, %58 : vector<2x256xf32>
    %cst_40 = arith.constant dense<0.000000e+00> : vector<2x64xf32>
    %60 = tpu.matmul %59, %12, %cst_40 {dimension_numbers = #tpu.dot_dimension_numbers<[1], [0], [0], [1], [0, 0, 1, 1], [], []>} : vector<2x256xf32>, vector<256x64xf32>, vector<2x64xf32> -> vector<2x64xf32>
    %61 = vector.broadcast %13 : vector<1x64xf32> to vector<2x64xf32>
    %62 = arith.addf %60, %61 : vector<2x64xf32>
    %cst_41 = arith.constant dense<0.000000e+00> : vector<2x32xf32>
    %63 = tpu.matmul %52, %4, %cst_41 {dimension_numbers = #tpu.dot_dimension_numbers<[1], [0], [0], [1], [0, 0, 1, 1], [], []>} : vector<2x64xf32>, vector<64x32xf32>, vector<2x32xf32> -> vector<2x32xf32>
    %64 = vector.broadcast %56 : f32 to vector<1x32xf32>
    %65 = arith.mulf %64, %3 : vector<1x32xf32>
    %66 = vector.broadcast %65 : vector<1x32xf32> to vector<2x32xf32>
    %67 = arith.addf %63, %66 : vector<2x32xf32>
    %68 = vector.broadcast %5 : vector<1x32xf32> to vector<2x32xf32>
    %69 = arith.addf %67, %68 : vector<2x32xf32>
    %70 = math.tanh %69 : vector<2x32xf32>
    %cst_42 = arith.constant dense<0.000000e+00> : vector<2x32xf32>
    %71 = tpu.matmul %70, %6, %cst_42 {dimension_numbers = #tpu.dot_dimension_numbers<[1], [0], [0], [1], [0, 0, 1, 1], [], []>} : vector<2x32xf32>, vector<32x32xf32>, vector<2x32xf32> -> vector<2x32xf32>
    %72 = vector.broadcast %7 : vector<1x32xf32> to vector<2x32xf32>
    %73 = arith.addf %71, %72 : vector<2x32xf32>
    %cst_43 = arith.constant 0.000000e+00 : f32
    %74 = vector.broadcast %cst_43 : f32 to vector<2x32xf32>
    %75 = arith.maximumf %73, %74 : vector<2x32xf32>
    %76 = math.absf %73 : vector<2x32xf32>
    %cst_44 = arith.constant 0.000000e+00 : f32
    %77 = vector.broadcast %cst_44 : f32 to vector<2x32xf32>
    %78 = arith.subf %77, %76 : vector<2x32xf32>
    %79 = math.exp %78 : vector<2x32xf32>
    %cst_45 = arith.constant 1.000000e+00 : f32
    %80 = vector.broadcast %cst_45 : f32 to vector<2x32xf32>
    %81 = arith.addf %80, %79 : vector<2x32xf32>
    %82 = math.log %81 : vector<2x32xf32>
    %83 = arith.addf %75, %82 : vector<2x32xf32>
    %cst_46 = arith.constant dense<0.000000e+00> : vector<2x64xf32>
    %84 = tpu.matmul %83, %8, %cst_46 {dimension_numbers = #tpu.dot_dimension_numbers<[1], [0], [0], [1], [0, 0, 1, 1], [], []>} : vector<2x32xf32>, vector<32x64xf32>, vector<2x64xf32> -> vector<2x64xf32>
    %85 = vector.broadcast %9 : vector<1x64xf32> to vector<2x64xf32>
    %86 = arith.addf %84, %85 : vector<2x64xf32>
    %87 = arith.addf %86, %62 : vector<2x64xf32>
    %88 = vector.broadcast %2 : f32 to vector<2x64xf32>
    %89 = arith.mulf %87, %88 : vector<2x64xf32>
    %90 = arith.addf %52, %89 : vector<2x64xf32>
    %c2 = arith.constant 2 : index
    %c0_47 = arith.constant 0 : index
    %c0_48 = arith.constant 0 : index
    %91 = vector.load %arg13[%c2, %c0_47, %c0_48] : memref<4x2x64xf32, #tpu.memory_space<vmem>>, vector<1x2x64xf32>
    %92 = vector.shape_cast %91 : vector<1x2x64xf32> to vector<2x64xf32>
    %93 = vector.shape_cast %90 : vector<2x64xf32> to vector<1x2x64xf32>
    tpu.vector_store %arg13[%c2, %c0_47, %c0_48], %93 {strides = array<i32>} : memref<4x2x64xf32, #tpu.memory_space<vmem>>, vector<1x2x64xf32>,
    %c2_49 = arith.constant 2 : index
    %94 = memref.load %arg0[%c2_49] : memref<4xf32, #tpu.memory_space<smem>>
    %cst_50 = arith.constant dense<0.000000e+00> : vector<2x256xf32>
    %95 = tpu.matmul %62, %10, %cst_50 {dimension_numbers = #tpu.dot_dimension_numbers<[1], [0], [0], [1], [0, 0, 1, 1], [], []>} : vector<2x64xf32>, vector<64x256xf32>, vector<2x256xf32> -> vector<2x256xf32>
    %96 = vector.broadcast %11 : vector<1x256xf32> to vector<2x256xf32>
    %97 = arith.addf %95, %96 : vector<2x256xf32>
    %cst_51 = arith.constant dense<0.000000e+00> : vector<2x64xf32>
    %98 = tpu.matmul %97, %12, %cst_51 {dimension_numbers = #tpu.dot_dimension_numbers<[1], [0], [0], [1], [0, 0, 1, 1], [], []>} : vector<2x256xf32>, vector<256x64xf32>, vector<2x64xf32> -> vector<2x64xf32>
    %99 = vector.broadcast %13 : vector<1x64xf32> to vector<2x64xf32>
    %100 = arith.addf %98, %99 : vector<2x64xf32>
    %cst_52 = arith.constant dense<0.000000e+00> : vector<2x32xf32>
    %101 = tpu.matmul %90, %4, %cst_52 {dimension_numbers = #tpu.dot_dimension_numbers<[1], [0], [0], [1], [0, 0, 1, 1], [], []>} : vector<2x64xf32>, vector<64x32xf32>, vector<2x32xf32> -> vector<2x32xf32>
    %102 = vector.broadcast %94 : f32 to vector<1x32xf32>
    %103 = arith.mulf %102, %3 : vector<1x32xf32>
    %104 = vector.broadcast %103 : vector<1x32xf32> to vector<2x32xf32>
    %105 = arith.addf %101, %104 : vector<2x32xf32>
    %106 = vector.broadcast %5 : vector<1x32xf32> to vector<2x32xf32>
    %107 = arith.addf %105, %106 : vector<2x32xf32>
    %108 = math.tanh %107 : vector<2x32xf32>
    %cst_53 = arith.constant dense<0.000000e+00> : vector<2x32xf32>
    %109 = tpu.matmul %108, %6, %cst_53 {dimension_numbers = #tpu.dot_dimension_numbers<[1], [0], [0], [1], [0, 0, 1, 1], [], []>} : vector<2x32xf32>, vector<32x32xf32>, vector<2x32xf32> -> vector<2x32xf32>
    %110 = vector.broadcast %7 : vector<1x32xf32> to vector<2x32xf32>
    %111 = arith.addf %109, %110 : vector<2x32xf32>
    %cst_54 = arith.constant 0.000000e+00 : f32
    %112 = vector.broadcast %cst_54 : f32 to vector<2x32xf32>
    %113 = arith.maximumf %111, %112 : vector<2x32xf32>
    %114 = math.absf %111 : vector<2x32xf32>
    %cst_55 = arith.constant 0.000000e+00 : f32
    %115 = vector.broadcast %cst_55 : f32 to vector<2x32xf32>
    %116 = arith.subf %115, %114 : vector<2x32xf32>
    %117 = math.exp %116 : vector<2x32xf32>
    %cst_56 = arith.constant 1.000000e+00 : f32
    %118 = vector.broadcast %cst_56 : f32 to vector<2x32xf32>
    %119 = arith.addf %118, %117 : vector<2x32xf32>
    %120 = math.log %119 : vector<2x32xf32>
    %121 = arith.addf %113, %120 : vector<2x32xf32>
    %cst_57 = arith.constant dense<0.000000e+00> : vector<2x64xf32>
    %122 = tpu.matmul %121, %8, %cst_57 {dimension_numbers = #tpu.dot_dimension_numbers<[1], [0], [0], [1], [0, 0, 1, 1], [], []>} : vector<2x32xf32>, vector<32x64xf32>, vector<2x64xf32> -> vector<2x64xf32>
    %123 = vector.broadcast %9 : vector<1x64xf32> to vector<2x64xf32>
    %124 = arith.addf %122, %123 : vector<2x64xf32>
    %125 = arith.addf %124, %100 : vector<2x64xf32>
    %126 = vector.broadcast %2 : f32 to vector<2x64xf32>
    %127 = arith.mulf %125, %126 : vector<2x64xf32>
    %128 = arith.addf %90, %127 : vector<2x64xf32>
    %c3 = arith.constant 3 : index
    %c0_58 = arith.constant 0 : index
    %c0_59 = arith.constant 0 : index
    %129 = vector.load %arg13[%c3, %c0_58, %c0_59] : memref<4x2x64xf32, #tpu.memory_space<vmem>>, vector<1x2x64xf32>
    %130 = vector.shape_cast %129 : vector<1x2x64xf32> to vector<2x64xf32>
    %131 = vector.shape_cast %128 : vector<2x64xf32> to vector<1x2x64xf32>
    tpu.vector_store %arg13[%c3, %c0_58, %c0_59], %131 {strides = array<i32>} : memref<4x2x64xf32, #tpu.memory_space<vmem>>, vector<1x2x64xf32>,
    return
  }
}

</mosaic_0001>

<bundles_post_ra>
// kernel: csneural_ode_forward.1
= control target key start
LH: loop header
LB: loop body
LE: loop exit
PB: predicated region body
PF: predicated region fallthrough
CT: control target
= control target key end

     0   :  { %18 = vsyncpa [#allocation4], 0  ;;  %s2483_s0 = inlined_call_operand.vmem [shape: f32[4], index: 0, kind: input, shape index: {}]   ;;  %s2484_s1 = inlined_call_operand.vmem [shape: f32[2,64], index: 1, kind: input, shape index: {}]   ;;  %s2485_s2 = inlined_call_operand.vmem [shape: f32[1,32], index: 2, kind: input, shape index: {}]   ;;  %s2486_s3 = inlined_call_operand.vmem [shape: f32[64,32], index: 3, kind: input, shape index: {}]   ;;  %s2487_s4 = inlined_call_operand.vmem [shape: f32[1,32], index: 4, kind: input, shape index: {}]   ;;  %s2488_s5 = inlined_call_operand.vmem [shape: f32[32,32], index: 5, kind: input, shape index: {}]   ;;  %s2489_s6 = inlined_call_operand.vmem [shape: f32[1,32], index: 6, kind: input, shape index: {}]   ;;  %s2490_s7 = inlined_call_operand.vmem [shape: f32[32,64], index: 7, kind: input, shape index: {}]   ;;  %s2491_s8 = inlined_call_operand.vmem [shape: f32[1,64], index: 8, kind: input, shape index: {}]   ;;  %s2492_s9 = inlined_call_operand.vmem [shape: f32[64,256], index: 9, kind: input, shape index: {}]   ;;  %s2493_s10 = inlined_call_operand.vmem [shape: f32[1,256], index: 10, kind: input, shape index: {}]   ;;  %s2494_s11 = inlined_call_operand.vmem [shape: f32[256,64], index: 11, kind: input, shape index: {}]   ;;  %s2495_s12 = inlined_call_operand.vmem [shape: f32[1,64], index: 12, kind: input, shape index: {}]   ;;  %s2496_s13 = inlined_call_operand.hbm [shape: f32[4,2,64], index: 13, kind: output, shape index: {}]  }
   0x1   :  { %19 = vsyncpa [#allocation3], 0  ;;  %s26_s27 = sshll.u32 %s2483_s0, 4  ;;  %s27_s27 = int_to_ptr.vmem [resolvable:$true] %s26_s27 }
   0x2   :  { %s1678_s28 = scalar_lea.vmem %s27_s27, 16  ;;  %p1683_p1 = scmp.lt.s32.totalorder %s27_s27, %s27_s27 }
   0x3   :  { %p1679_p0 = scmp.ne.s32.totalorder %s27_s27, %s1678_s28  ;;  %p1684_p2 = scmp.lt.s32.totalorder %s1678_s28, %s1678_s28 }
   0x5   :  { %p1685_p3 = por %p1684_p2, %p1683_p1 }
   0x7   :  { %p1686_p4 = pnand %p1685_p3, %p1679_p0 }
   0x9   :  { %1689 = shalt.err (!%p1686_p4)
}
   0xa   :  { %s1714_s29 = smov [#allocation2]  }
   0xb   :  { %29 = dma.vmem_to_smem %s27_s27, 16, %s1714_s29, [#allocation4]  }
   0xc   :  { %1710 = dma.done.wait [#allocation4], 16  }
   0xd   :  { %1711 = vsyncadd [#allocation4], 4294967280 }
   0xe   :  { %57 = sfence }
   0xf   :  { %v1796_v0 = vld [vmem:[%s2492_s9 + $0x78] sm:$0xff]  ;;  %v1801_v1 = vld [vmem:[%s2492_s9 + $0x70] sm:$0xff]  ;;  %v1806_v2 = vld [vmem:[%s2492_s9 + $0x68] sm:$0xff]  ;;  %v2504_v4 = vmov 0.0   ;;  %vm132_vm0 = vcmask 517120   ;;  %vm146_vm1 = vcmask 523264   ;;  %v136_v62 = vlaneseq }
  0x10   :  { %2538 = vst [vmem:[#allocation8_spill] sm:$0xff] %v1796_v0  ;;  %166 = vmatprep.subr.mxu0 %v1796_v0  ;;  %v1812_v3 = vld [vmem:[%s2492_s9 + $0x60] sm:$0xff]  ;;  %214 = vmatprep.mubr.f32.mxu0 %v2504_v4  ;;  %v1819_v5 = vld [vmem:[%s2492_s9 + $0x58] sm:$0xff]  ;;  %v1825_v6 = vld [vmem:[%s2492_s9 + $0x50] sm:$0xff]  ;;  %vm1716_vm2 = vmmov 0   ;;  %vm389_vm3 = vcmask 261120  }
  0x11   :  { %167 = vmatpush1.msra.mxu0 %v1801_v1  ;;  %v1831_v7 = vld [vmem:[%s2492_s9 + $0x48] sm:$0xff]  ;;  %v1837_v8 = vld [vmem:[%s2492_s9 + $0x40] sm:$0xff]  ;;  %v1848_v10 = vld [vmem:[%s2492_s9 + $0x38] sm:$0xff]  ;;  %v137_v63 = vshrl.u32 %v136_v62, 7  ;;  %s1717_s28 = smov [#allocation5]  }
  0x12   :  { %168 = vmatprep.subr.mxu0 %v1806_v2  ;;  %v1842_v9 = vld [vmem:[%s2484_s1] sm:$0x3]  ;;  %v1856_v11 = vld [vmem:[%s2492_s9 + $0x30] sm:$0xff]  ;;  %v1862_v12 = vld [vmem:[%s2492_s9 + $0x28] sm:$0xff]  ;;  %s2188_s1 = sld [smem:[#allocation2]] }
  0x13   :  { %169 = vmatpush1.msra.mxu0 %v1812_v3  ;;  %2539 = vst [vmem:[#allocation9_spill] sm:$0xff] %v1842_v9  ;;  %133 = vst.msk [vmem:[#allocation5] sm:$0x3] %vm132_vm0, %v1842_v9  ;;  %v1867_v13 = vld [vmem:[%s2494_s11 + $0xf8] sm:$0xff]  ;;  %v1878_v15 = vld [vmem:[%s2492_s9 + $0x20] sm:$0xff] }
  0x14   :  { %170 = vmatprep.subr.mxu0 %v1819_v5  ;;  %v1872_v14 = vld [vmem:[%s2494_s11 + $0x78] sm:$0xff]  ;;  %1369 = vmatprep.subr.mxu1 %v1867_v13  ;;  %v1884_v16 = vld [vmem:[%s2494_s11 + $0xf0] sm:$0xff]  ;;  %v1901_v19 = vld [vmem:[%s2494_s11 + $0xe8] sm:$0xff] }
  0x15   :  { %171 = vmatpush1.msra.mxu0 %v1825_v6  ;;  %v1889_v17 = vld [vmem:[%s2494_s11 + $0x70] sm:$0xff]  ;;  %v1895_v18 = vld [vmem:[%s2492_s9 + $0x18] sm:$0xff]  ;;  %1370 = vmatpush3.msra.mxu1 %v1872_v14  ;;  %v1913_v21 = vld [vmem:[%s2494_s11 + $0x68] sm:$0xff] }
  0x16   :  { %172 = vmatprep.subr.mxu0 %v1831_v7  ;;  %v1907_v20 = vld [vmem:[%s2492_s9 + $0x10] sm:$0xff]  ;;  %1371 = vmatprep.subr.mxu1 %v1884_v16  ;;  %v1919_v22 = vld [vmem:[%s2492_s9 + $0x8] sm:$0xff]  ;;  %v1925_v23 = vld [vmem:[%s2494_s11 + $0xe0] sm:$0xff] }
  0x17   :  { %173 = vmatpush1.msra.mxu0 %v1837_v8  ;;  %2540 = vst [vmem:[#allocation10_spill] sm:$0xff] %v1919_v22  ;;  %1372 = vmatpush3.msra.mxu1 %v1889_v17  ;;  %v1931_v24 = vld [vmem:[%s2492_s9] sm:$0xff]  ;;  %v1945_v26 = vld [vmem:[%s2486_s3 + $0x38] sm:$0xff]  ;;  %v1961_v28 = vld [vmem:[%s2486_s3 + $0x30] sm:$0xff] }
  0x18   :  { %174 = vmatprep.subr.mxu0 %v1848_v10  ;;  %2541 = vst [vmem:[#allocation11_spill] sm:$0xff] %v1931_v24  ;;  %1373 = vmatprep.subr.mxu1 %v1901_v19  ;;  %v1937_v25 = vld [vmem:[%s2494_s11 + $0x60] sm:$0xff]  ;;  %2542 = vst [vmem:[#allocation12_spill] sm:$0xff] %v1945_v26  ;;  %v1953_v27 = vld [vmem:[%s2494_s11 + $0xd8] sm:$0xff] }
  0x19   :  { %175 = vmatpush1.msra.mxu0 %v1856_v11  ;;  %1374 = vmatpush3.msra.mxu1 %v1913_v21  ;;  %2543 = vst [vmem:[#allocation13_spill] sm:$0xff] %v1961_v28  ;;  %v1966_v29 = vld [vmem:[%s2494_s11 + $0x58] sm:$0xff]  ;;  %v1974_v30 = vld [vmem:[%s2494_s11 + $0xd0] sm:$0xff]  ;;  %v1980_v31 = vld [vmem:[%s2486_s3 + $0x28] sm:$0xff] }
  0x1a   :  { %176 = vmatprep.subr.mxu0 %v1862_v12  ;;  %1375 = vmatprep.subr.mxu1 %v1925_v23  ;;  %2544 = vst [vmem:[#allocation14_spill] sm:$0xff] %v1980_v31  ;;  %v1986_v32 = vld [vmem:[%s2494_s11 + $0x50] sm:$0xff]  ;;  %v1993_v33 = vld [vmem:[%s2494_s11 + $0xc8] sm:$0xff]  ;;  %v1999_v34 = vld [vmem:[%s2486_s3 + $0x20] sm:$0xff] }
  0x1b   :  { %177 = vmatpush1.msra.mxu0 %v1878_v15  ;;  %1376 = vmatpush3.msra.mxu1 %v1937_v25  ;;  %2545 = vst [vmem:[#allocation15_spill] sm:$0xff] %v1999_v34  ;;  %v2005_v35 = vld [vmem:[%s2494_s11 + $0x48] sm:$0xff]  ;;  %v2012_v36 = vld [vmem:[%s2494_s11 + $0xc0] sm:$0xff]  ;;  %v2018_v37 = vld [vmem:[%s2486_s3 + $0x18] sm:$0xff] }
  0x1c   :  { %178 = vmatprep.subr.mxu0 %v1895_v18  ;;  %1377 = vmatprep.subr.mxu1 %v1953_v27  ;;  %2546 = vst [vmem:[#allocation16_spill] sm:$0xff] %v2018_v37  ;;  %v2024_v38 = vld [vmem:[%s2494_s11 + $0x40] sm:$0xff]  ;;  %v2031_v39 = vld [vmem:[%s2494_s11 + $0xb8] sm:$0xff]  ;;  %v2037_v40 = vld [vmem:[%s2486_s3 + $0x10] sm:$0xff] }
  0x1d   :  { %179 = vmatpush1.msra.mxu0 %v1907_v20  ;;  %1378 = vmatpush3.msra.mxu1 %v1966_v29  ;;  %2547 = vst [vmem:[#allocation17_spill] sm:$0xff] %v2037_v40  ;;  %v2043_v41 = vld [vmem:[%s2494_s11 + $0x38] sm:$0xff]  ;;  %v2050_v42 = vld [vmem:[%s2494_s11 + $0xb0] sm:$0xff]  ;;  %v2056_v43 = vld [vmem:[%s2486_s3 + $0x8] sm:$0xff] }
  0x1e   :  { %180 = vmatprep.subr.mxu0 %v1919_v22  ;;  %1379 = vmatprep.subr.mxu1 %v1974_v30  ;;  %2548 = vst [vmem:[#allocation18_spill] sm:$0xff] %v2056_v43  ;;  %v2062_v44 = vld [vmem:[%s2494_s11 + $0x30] sm:$0xff]  ;;  %v2069_v45 = vld [vmem:[%s2494_s11 + $0xa8] sm:$0xff]  ;;  %v2075_v46 = vld [vmem:[%s2486_s3] sm:$0xff]  ;;  %s1338_s3 = sshll.u32 %s1717_s28, 4  ;;  %s1339_s3 = int_to_ptr.vmem [resolvable:$true] %s1338_s3 }
  0x1f   :  { %181 = vmatpush1.msra.mxu0 %v1931_v24  ;;  %1380 = vmatpush3.msra.mxu1 %v1986_v32  ;;  %2549 = vst [vmem:[#allocation19_spill] sm:$0xff] %v2075_v46  ;;  %v2081_v47 = vld [vmem:[%s2494_s11 + $0x28] sm:$0xff]  ;;  %v2088_v48 = vld [vmem:[%s2494_s11 + $0xa0] sm:$0xff]  ;;  %v2102_v50 = vld [vmem:[%s2494_s11 + $0x98] sm:$0xff]  ;;  %p1695_p6 = scmp.lt.s32.totalorder %s1339_s3, %s1339_s3 }
  0x20   :  { %1351 = vmatmul.mubr.msk.f32.vlgmr.msra.gmra.mxu0 %vm146_vm1, %v1842_v9  ;;  %1531 = vmatprep.subr.mxu0 %v2504_v4  ;;  %v2095_v49 = vld [vmem:[%s2494_s11 + $0x20] sm:$0xff]  ;;  %v2110_v51 = vld [vmem:[%s2494_s11 + $0x18] sm:$0xff]  ;;  %v2121_v52 = vld [vmem:[%s2494_s11 + $0x90] sm:$0xff] }
  0x21   :  { %1532 = vmatpush3.msra.mxu0 %v1945_v26  ;;  %1547 = vmatprep.mubr.msk.f32.mxu0 %vm1716_vm2, %v2504_v4  ;;  %v2127_v53 = vld [vmem:[%s2494_s11 + $0x10] sm:$0xff]  ;;  %v2133_v54 = vld [vmem:[%s2494_s11 + $0x88] sm:$0xff]  ;;  %v2144_v56 = vld [vmem:[%s2494_s11 + $0x80] sm:$0xff] }
  0x22   :  { %1533 = vmatprep.subr.mxu0 %v2504_v4  ;;  %1381 = vmatprep.subr.mxu1 %v1993_v33  ;;  %v2139_v55 = vld [vmem:[%s2494_s11 + $0x8] sm:$0xff]  ;;  %2551 = vst [vmem:[#allocation21_spill] sm:$0xff] %v2144_v56  ;;  %v2149_v57 = vld [vmem:[%s2494_s11] sm:$0xff]  ;;  %v2158_v58 = vld [vmem:[%s2488_s5 + $0x18] sm:$0xff]  ;;  %s1690_s11 = scalar_lea.vmem %s1339_s3, 128 }
  0x23   :  { %1534 = vmatpush3.msra.mxu0 %v1961_v28  ;;  %1382 = vmatpush3.msra.mxu1 %v2005_v35  ;;  %2550 = vst [vmem:[#allocation20_spill] sm:$0xff] %v2139_v55  ;;  %2552 = vst [vmem:[#allocation22_spill] sm:$0xff] %v2149_v57  ;;  %v2163_v59 = vld [vmem:[%s2488_s5 + $0x10] sm:$0xff]  ;;  %v2170_v60 = vld [vmem:[%s2488_s5 + $0x8] sm:$0xff]  ;;  %p1691_p5 = scmp.ne.s32.totalorder %s1339_s3, %s1690_s11  ;;  %p1696_p7 = scmp.lt.s32.totalorder %s1690_s11, %s1690_s11 }
  0x24   :  { %1535 = vmatprep.subr.mxu0 %v2504_v4  ;;  %1383 = vmatprep.subr.mxu1 %v2012_v36  ;;  %2553 = vst [vmem:[#allocation23_spill] sm:$0xff] %v2158_v58  ;;  %2554 = vst [vmem:[#allocation24_spill] sm:$0xff] %v2163_v59  ;;  %v2177_v61 = vld [vmem:[%s2488_s5] sm:$0xff] }
  0x25   :  { %1536 = vmatpush3.msra.mxu0 %v1980_v31  ;;  %1384 = vmatpush3.msra.mxu1 %v2024_v38  ;;  %2555 = vst [vmem:[#allocation25_spill] sm:$0xff] %v2170_v60  ;;  %2556 = vst [vmem:[#allocation26_spill] sm:$0xff] %v2177_v61  ;;  %p1697_p8 = por %p1696_p7, %p1695_p6 }
  0x26   :  { %1537 = vmatprep.subr.mxu0 %v2504_v4  ;;  %1385 = vmatprep.subr.mxu1 %v2031_v39 }
  0x27   :  { %1538 = vmatpush3.msra.mxu0 %v1999_v34  ;;  %1386 = vmatpush3.msra.mxu1 %v2043_v41  ;;  %p1698_p9 = pnand %p1697_p8, %p1691_p5 }
  0x28   :  { %1539 = vmatprep.subr.mxu0 %v2504_v4  ;;  %1387 = vmatprep.subr.mxu1 %v2050_v42 }
  0x29   :  { %1540 = vmatpush3.msra.mxu0 %v2018_v37  ;;  %1388 = vmatpush3.msra.mxu1 %v2062_v44 }
  0x2a   :  { %1541 = vmatprep.subr.mxu0 %v2504_v4  ;;  %1389 = vmatprep.subr.mxu1 %v2069_v45 }
  0x2b   :  { %1542 = vmatpush3.msra.mxu0 %v2037_v40  ;;  %1390 = vmatpush3.msra.mxu1 %v2081_v47 }
  0x2c   :  { %1543 = vmatprep.subr.mxu0 %v2504_v4  ;;  %1391 = vmatprep.subr.mxu1 %v2088_v48 }
  0x2d   :  { %1544 = vmatpush3.msra.mxu0 %v2056_v43  ;;  %1392 = vmatpush3.msra.mxu1 %v2095_v49 }
  0x2e   :  { %1545 = vmatprep.subr.mxu0 %v2504_v4  ;;  %1393 = vmatprep.subr.mxu1 %v2102_v50 }
  0x2f   :  { %1546 = vmatpush3.msra.mxu0 %v2075_v46  ;;  %1394 = vmatpush3.msra.mxu1 %v2110_v51 }
  0x30   :  { %1548 = vmatmul.mubr.msk.f32.vlgmr.msra.gmra.mxu0 %vm146_vm1, %v1842_v9  ;;  %1550 = vmatprep.subr.mxu0 %v2504_v4  ;;  %v2186_v9 = vsub.s32 0, %v137_v63 }
  0x31   :  { %1558 = vmatprep.mubr.msk.f32.mxu0 %vm1716_vm2, %v2504_v4  ;;  %1395 = vmatprep.subr.mxu1 %v2121_v52 }
  0x32   :  { %1396 = vmatpush3.msra.mxu1 %v2127_v53  ;;  %1551 = vmatpush3.msra.mxu0 %v2158_v58  ;;  %v142_v58 = vsub.s32 1, %v137_v63  ;;  %v2200_v63 = vld [vmem:[%s2485_s2] sm:$0x1] }
  0x33   :  { %1397 = vmatprep.subr.mxu1 %v2133_v54  ;;  %1552 = vmatprep.subr.mxu0 %v2504_v4 }
  0x34   :  { %1398 = vmatpush3.msra.mxu1 %v2139_v55  ;;  %1553 = vmatpush3.msra.mxu0 %v2163_v59  ;;  %v97_v59 = vld [vmem:[%s2493_s10] sm:$0x3]  ;;  %v2559_v55 = vmov 0.0  }
  0x35   :  { %1399 = vmatprep.subr.mxu1 %v2144_v56  ;;  %1554 = vmatprep.subr.mxu0 %v2504_v4  ;;  %v297_v56 = vstv %s2188_s1 }
  0x36   :  { %1400 = vmatpush3.msra.mxu1 %v2149_v57  ;;  %1555 = vmatpush3.msra.mxu0 %v2170_v60  ;;  %v2190_v57 = vrot.slane %v97_v59, %v142_v58  ;;  %v298_v58 = vmul.f32 %v297_v56, %v2200_v63  ;;  %v2241_v56 = vld [vmem:[%s2490_s7 + $0x10] sm:$0xff] }
  0x37   :  { %1561 = vmatprep.subr.mxu1 %v2504_v4  ;;  %1556 = vmatprep.subr.mxu0 %v2504_v4  ;;  %v2193_v4 = vrot.slane %v97_v59, %v2186_v9 }
  0x38   :  { %1557 = vmatpush3.msra.mxu0 %v2177_v61  ;;  %2557 = vst [vmem:[#allocation27_spill] sm:$0xff] %v2190_v57  ;;  %v303_v59 = vrot.slane %v298_v58, %v2186_v9  ;;  %v2255_v58 = vld [vmem:[%s2490_s7] sm:$0xff] }
  0x39   :  { %577 = vmatprep.subr.mxu0 %v1796_v0  ;;  %2558 = vst [vmem:[#allocation28_spill] sm:$0xff] %v2193_v4  ;;  %2561 = vst [vmem:[#allocation30_spill] sm:$0xff] %v2255_v58 }
  0xe0   :  { %v216_v61 = vpop.f32.mrf.mxu0 }
  0xe1   :  { %v217_v62 = vadd.f32 %v216_v61, %v2193_v4 }
  0xe2   :  { %v218_v60 = vpop.f32.mrf.mxu0 }
  0xe3   :  { %v219_v0 = vadd.f32 %v218_v60, %v2190_v57  ;;  %v2210_v60 = vld [vmem:[%s2487_s4] ss:$0 sm:$0xff] }
  0xe5   :  { %291 = vmatprep.mubr.f32.mxu1 %v219_v0 }
  0xe6   :  { %292 = vmatmul.mubr.f32.vlgmr.msra.gmra.mxu1 %v217_v62 }
  0xe7   :  { %1569 = vmatprep.mubr.msk.f32.mxu1 %vm1716_vm2, %v2559_v55 }
  0xf0   :  { %v371_v0 = vpop.f32.mrf.mxu0 }
  0xf1   :  { %v372_v61 = vadd.f32 %v371_v0, %v303_v59  ;;  %v2262_v0 = vld [vmem:[%s2495_s12] ss:$0 sm:$0xff] }
  0xf2   :  { %v1549_v62 = vpop.f32.mrf.mxu0  ;;  %2562 = vst [vmem:[#allocation31_spill] sm:$0xff] %v2262_v0 }
  0xf3   :  { %v381_v4 = vadd.f32 %v2210_v60, %v372_v61 }
  0xf5   :  { %1660 = vtanh.f32 %v381_v4  ;;  %v2234_v4 = vld [vmem:[%s2490_s7 + $0x18] sm:$0xff] }
  0xf6   :  { %1562 = vmatpush3.msra.mxu1 %v2234_v4 }
  0xf7   :  { %1563 = vmatprep.subr.mxu1 %v2559_v55 }
  0xf8   :  { %1564 = vmatpush3.msra.mxu1 %v2241_v56 }
  0xf9   :  { %1565 = vmatprep.subr.mxu1 %v2559_v55 }
 0x102   :  { %v1661_v57 = vpop.eup %1660 }
 0x103   :  { %1559 = vmatmul.mubr.msk.f32.vlgmr.msra.gmra.mxu0 %vm389_vm3, %v1661_v57  ;;  %v2248_v57 = vld [vmem:[%s2490_s7 + $0x8] sm:$0xff] }
 0x104   :  { %578 = vmatpush1.msra.mxu0 %v1801_v1  ;;  %625 = vmatprep.mubr.f32.mxu0 %v2559_v55  ;;  %2560 = vst [vmem:[#allocation29_spill] sm:$0xff] %v2248_v57 }
 0x105   :  { %579 = vmatprep.subr.mxu0 %v1806_v2  ;;  %1566 = vmatpush3.msra.mxu1 %v2248_v57 }
 0x106   :  { %580 = vmatpush1.msra.mxu0 %v1812_v3  ;;  %1567 = vmatprep.subr.mxu1 %v2559_v55 }
 0x107   :  { %581 = vmatprep.subr.mxu0 %v1819_v5  ;;  %1568 = vmatpush3.msra.mxu1 %v2255_v58 }
 0x108   :  { %582 = vmatpush1.msra.mxu0 %v1825_v6  ;;  %1423 = vmatprep.subr.mxu1 %v1867_v13 }
 0x109   :  { %583 = vmatprep.subr.mxu0 %v1831_v7 }
 0x10a   :  { %584 = vmatpush1.msra.mxu0 %v1837_v8 }
 0x10b   :  { %585 = vmatprep.subr.mxu0 %v1848_v10 }
 0x10c   :  { %586 = vmatpush1.msra.mxu0 %v1856_v11 }
 0x10d   :  { %587 = vmatprep.subr.mxu0 %v1862_v12 }
 0x10e   :  { %588 = vmatpush1.msra.mxu0 %v1878_v15 }
 0x10f   :  { %589 = vmatprep.subr.mxu0 %v1895_v18 }
 0x110   :  { %590 = vmatpush1.msra.mxu0 %v1907_v20 }
 0x111   :  { %591 = vmatprep.subr.mxu0 %v1919_v22 }
 0x112   :  { %592 = vmatpush1.msra.mxu0 %v1931_v24 }
 0x113   :  { %1572 = vmatprep.subr.mxu0 %v2559_v55 }
 0x1a6   :  { %v1401_v59 = vpop.f32.mrf.mxu1 }
 0x1a8   :  { %v1402_v61 = vpop.f32.mrf.mxu1 }
 0x1a9   :  { %v1403_v62 = vadd.f32 %v1402_v61, %v1401_v59  ;;  %v2290_v59 = vld [vmem:[%s2489_s6] ss:$0 sm:$0xff]  ;;  %s1350_s6 = sld [smem:[#allocation2 + $0x1]] }
 0x1ab   :  { %v2265_v24 = vadd.f32 %v1403_v62, %v2262_v0 }
 0x1ad   :  { %1360 = vmatmul.mubr.msk.f32.vlgmr.msra.gmra.mxu0 %vm146_vm1, %v2265_v24 }
 0x1ae   :  { %1573 = vmatpush3.msra.mxu0 %v1945_v26  ;;  %1588 = vmatprep.mubr.msk.f32.mxu0 %vm1716_vm2, %v2559_v55 }
 0x1af   :  { %1574 = vmatprep.subr.mxu0 %v2559_v55  ;;  %s60_s9 = ssub.f32 %s1350_s6, %s2188_s1 }
 0x1b0   :  { %1575 = vmatpush3.msra.mxu0 %v1961_v28 }
 0x1b1   :  { %1576 = vmatprep.subr.mxu0 %v2559_v55 }
 0x1b2   :  { %1577 = vmatpush3.msra.mxu0 %v1980_v31 }
 0x1b3   :  { %1578 = vmatprep.subr.mxu0 %v2559_v55 }
 0x1b4   :  { %1579 = vmatpush3.msra.mxu0 %v1999_v34 }
 0x1b5   :  { %1580 = vmatprep.subr.mxu0 %v2559_v55 }
 0x1b6   :  { %1581 = vmatpush3.msra.mxu0 %v2018_v37 }
 0x1b7   :  { %1582 = vmatprep.subr.mxu0 %v2559_v55 }
 0x1b8   :  { %1583 = vmatpush3.msra.mxu0 %v2037_v40 }
 0x1b9   :  { %1584 = vmatprep.subr.mxu0 %v2559_v55 }
 0x1ba   :  { %1585 = vmatpush3.msra.mxu0 %v2056_v43 }
 0x1bb   :  { %1586 = vmatprep.subr.mxu0 %v2559_v55 }
 0x1bc   :  { %1587 = vmatpush3.msra.mxu0 %v2075_v46 }
 0x1bd   :  { %1591 = vmatprep.subr.mxu0 %v2559_v55 }
 0x1c3   :  { %v459_v61 = vpop.f32.mrf.mxu0 }
 0x1c4   :  { %v460_v62 = vadd.f32 %v2290_v59, %v459_v61 }
 0x1c5   :  { %v1560_v37 = vpop.f32.mrf.mxu0 }
 0x1c6   :  { %v464_v40 = vand.u32 2147483647, %v460_v62  ;;  %v463_v46 = vmax.f32 %v460_v62, 0.0  ;;  %v2566_v37 = vld [vmem:[#allocation27_spill] sm:$0xff] }
 0x1c8   :  { %v465_v34 = vsub.f32 0.0, %v464_v40 }
 0x1ca   :  { %v466_v31 = vmul.f32 1.442695, %v465_v34 }
 0x1cc   :  { %1662 = vpow2.f32 %v466_v31 }
 0x1d9   :  { %v1663_v43 = vpop.eup %1662 }
 0x1da   :  { %v468_v28 = vadd.f32 1.0, %v1663_v43  ;;  %v2567_v43 = vld [vmem:[#allocation28_spill] sm:$0xff] }
 0x1dc   :  { %1664 = vlog2.f32 %v468_v28  ;;  %v2565_v28 = vld [vmem:[#allocation22_spill] sm:$0xff] }
 0x1e9   :  { %v1665_v26 = vpop.eup %1664 }
 0x1ea   :  { %v470_v22 = vmul.f32 0.6931472, %v1665_v26  ;;  %v2564_v26 = vld [vmem:[#allocation21_spill] sm:$0xff] }
 0x1ec   :  { %v471_v0 = vadd.f32 %v470_v22, %v463_v46  ;;  %v2563_v22 = vld [vmem:[#allocation20_spill] sm:$0xff] }
 0x1ee   :  { %1570 = vmatmul.mubr.msk.f32.vlgmr.msra.gmra.mxu1 %vm389_vm3, %v471_v0  ;;  %v2342_v0 = vld [vmem:[%s2491_s8] ss:$0 sm:$0xff]  ;;  %s1364_s8 = sld [smem:[#allocation2 + $0x2]] }
 0x1ef   :  { %1424 = vmatpush3.msra.mxu1 %v1872_v14  ;;  %2568 = vst [vmem:[#allocation20_spill] sm:$0xff] %v2342_v0 }
 0x1f0   :  { %1425 = vmatprep.subr.mxu1 %v1884_v16 }
 0x1f1   :  { %1426 = vmatpush3.msra.mxu1 %v1889_v17 }
 0x1f2   :  { %1427 = vmatprep.subr.mxu1 %v1901_v19 }
 0x1f3   :  { %1428 = vmatpush3.msra.mxu1 %v1913_v21 }
 0x1f4   :  { %1429 = vmatprep.subr.mxu1 %v1925_v23 }
 0x1f5   :  { %1430 = vmatpush3.msra.mxu1 %v1937_v25 }
 0x1f6   :  { %1431 = vmatprep.subr.mxu1 %v1953_v27 }
 0x1f7   :  { %1432 = vmatpush3.msra.mxu1 %v1966_v29 }
 0x1f8   :  { %1433 = vmatprep.subr.mxu1 %v1974_v30 }
 0x1f9   :  { %1434 = vmatpush3.msra.mxu1 %v1986_v32 }
 0x1fa   :  { %1435 = vmatprep.subr.mxu1 %v1993_v33 }
 0x1fb   :  { %1436 = vmatpush3.msra.mxu1 %v2005_v35 }
 0x1fc   :  { %1437 = vmatprep.subr.mxu1 %v2012_v36 }
 0x1fd   :  { %1438 = vmatpush3.msra.mxu1 %v2024_v38 }
 0x1fe   :  { %1439 = vmatprep.subr.mxu1 %v2031_v39 }
 0x1ff   :  { %1440 = vmatpush3.msra.mxu1 %v2043_v41 }
 0x200   :  { %1441 = vmatprep.subr.mxu1 %v2050_v42 }
 0x201   :  { %1442 = vmatpush3.msra.mxu1 %v2062_v44 }
 0x202   :  { %1443 = vmatprep.subr.mxu1 %v2069_v45 }
 0x203   :  { %1444 = vmatpush3.msra.mxu1 %v2081_v47 }
 0x204   :  { %1445 = vmatprep.subr.mxu1 %v2088_v48 }
 0x205   :  { %1446 = vmatpush3.msra.mxu1 %v2095_v49 }
 0x206   :  { %1447 = vmatprep.subr.mxu1 %v2102_v50 }
 0x207   :  { %1448 = vmatpush3.msra.mxu1 %v2110_v51 }
 0x208   :  { %1449 = vmatprep.subr.mxu1 %v2121_v52 }
 0x209   :  { %1450 = vmatpush3.msra.mxu1 %v2127_v53 }
 0x20a   :  { %1451 = vmatprep.subr.mxu1 %v2133_v54 }
 0x20b   :  { %1452 = vmatpush3.msra.mxu1 %v2563_v22 }
 0x20c   :  { %1453 = vmatprep.subr.mxu1 %v2564_v26 }
 0x20d   :  { %1454 = vmatpush3.msra.mxu1 %v2565_v28 }
 0x20e   :  { %1602 = vmatprep.subr.mxu1 %v2559_v55 }
 0x26d   :  { %v627_v31 = vpop.f32.mrf.mxu0 }
 0x26e   :  { %v628_v46 = vadd.f32 %v627_v31, %v2567_v43  ;;  %v2345_v31 = vstv %s60_s9 }
 0x26f   :  { %v629_v34 = vpop.f32.mrf.mxu0  ;;  %2569 = vst [vmem:[#allocation21_spill] sm:$0xff] %v2345_v31 }
 0x270   :  { %v630_v40 = vadd.f32 %v629_v34, %v2566_v37 }
 0x272   :  { %696 = vmatprep.mubr.f32.mxu1 %v630_v40 }
 0x273   :  { %697 = vmatmul.mubr.f32.vlgmr.msra.gmra.mxu1 %v628_v46 }
 0x274   :  { %1603 = vmatpush3.msra.mxu1 %v2234_v4  ;;  %1610 = vmatprep.mubr.msk.f32.mxu1 %vm1716_vm2, %v2559_v55 }
 0x275   :  { %1604 = vmatprep.subr.mxu1 %v2559_v55 }
 0x276   :  { %1605 = vmatpush3.msra.mxu1 %v2241_v56 }
 0x277   :  { %1606 = vmatprep.subr.mxu1 %v2559_v55 }
 0x278   :  { %1607 = vmatpush3.msra.mxu1 %v2248_v57 }
 0x279   :  { %1608 = vmatprep.subr.mxu1 %v2559_v55 }
 0x27a   :  { %1609 = vmatpush3.msra.mxu1 %v2255_v58  ;;  %v2570_v58 = vld [vmem:[#allocation9_spill] sm:$0xff] }
 0x27b   :  { %1477 = vmatprep.subr.mxu1 %v1867_v13  ;;  %v2572_v13 = vld [vmem:[#allocation23_spill] sm:$0xff] }
 0x2ae   :  { %v547_v61 = vpop.f32.mrf.mxu1 }
 0x2af   :  { %v548_v62 = vadd.f32 %v2342_v0, %v547_v61  ;;  %v2573_v61 = vld [vmem:[#allocation24_spill] sm:$0xff] }
 0x2b0   :  { %v1571_v34 = vpop.f32.mrf.mxu1 }
 0x2b1   :  { %v551_v40 = vadd.f32 %v548_v62, %v2265_v24  ;;  %v2574_v24 = vld [vmem:[#allocation25_spill] sm:$0xff]  ;;  %v2576_v62 = vld [vmem:[#allocation8_spill] sm:$0xff]  ;;  %v702_v34 = vstv %s1350_s6 }
 0x2b3   :  { %v553_v46 = vmul.f32 %v2345_v31, %v551_v40  ;;  %v703_v40 = vmul.f32 %v702_v34, %v2200_v63 }
 0x2b5   :  { %v2350_v57 = vadd.f32 %v553_v46, %v2570_v58  ;;  %v2575_v58 = vld [vmem:[#allocation26_spill] sm:$0xff]  ;;  %v708_v46 = vrot.slane %v703_v40, %v2186_v9 }
 0x2b7   :  { %2571 = vst [vmem:[#allocation22_spill] sm:$0xff] %v2350_v57  ;;  %556 = vst.msk [vmem:[#allocation5 + $0x2] sm:$0x3] %vm132_vm0, %v2350_v57  ;;  %1589 = vmatmul.mubr.msk.f32.vlgmr.msra.gmra.mxu0 %vm146_vm1, %v2350_v57 }
 0x2b8   :  { %1592 = vmatpush3.msra.mxu0 %v2572_v13  ;;  %1599 = vmatprep.mubr.msk.f32.mxu0 %vm1716_vm2, %v2559_v55 }
 0x2b9   :  { %1593 = vmatprep.subr.mxu0 %v2559_v55 }
 0x2ba   :  { %1594 = vmatpush3.msra.mxu0 %v2573_v61 }
 0x2bb   :  { %1595 = vmatprep.subr.mxu0 %v2559_v55 }
 0x2bc   :  { %1596 = vmatpush3.msra.mxu0 %v2574_v24 }
 0x2bd   :  { %1597 = vmatprep.subr.mxu0 %v2559_v55 }
 0x2be   :  { %1598 = vmatpush3.msra.mxu0 %v2575_v58 }
 0x2bf   :  { %965 = vmatprep.subr.mxu0 %v2576_v62 }
 0x333   :  { %v1455_v62 = vpop.f32.mrf.mxu1 }
 0x377   :  { %v779_v13 = vpop.f32.mrf.mxu0 }
 0x378   :  { %v780_v57 = vadd.f32 %v779_v13, %v708_v46 }
 0x379   :  { %v1590_v31 = vpop.f32.mrf.mxu0 }
 0x37a   :  { %v783_v61 = vadd.f32 %v2210_v60, %v780_v57  ;;  %v1456_v57 = vpop.f32.mrf.mxu1 }
 0x37c   :  { %1666 = vtanh.f32 %v783_v61 }
 0x389   :  { %v1667_v0 = vpop.eup %1666 }
 0x38a   :  { %1600 = vmatmul.mubr.msk.f32.vlgmr.msra.gmra.mxu0 %vm389_vm3, %v1667_v0 }
 0x38b   :  { %966 = vmatpush1.msra.mxu0 %v1801_v1  ;;  %1013 = vmatprep.mubr.f32.mxu0 %v2559_v55  ;;  %v1457_v1 = vadd.f32 %v1456_v57, %v1455_v62 }
 0x38c   :  { %967 = vmatprep.subr.mxu0 %v1806_v2  ;;  %v2577_v2 = vld [vmem:[#allocation31_spill] sm:$0xff] }
 0x38d   :  { %968 = vmatpush1.msra.mxu0 %v1812_v3  ;;  %v2385_v3 = vadd.f32 %v1457_v1, %v2577_v2 }
 0x38e   :  { %969 = vmatprep.subr.mxu0 %v1819_v5  ;;  %v2578_v5 = vld [vmem:[#allocation10_spill] sm:$0xff] }
 0x38f   :  { %970 = vmatpush1.msra.mxu0 %v1825_v6  ;;  %v2579_v6 = vld [vmem:[#allocation11_spill] sm:$0xff] }
 0x390   :  { %971 = vmatprep.subr.mxu0 %v1831_v7  ;;  %v2580_v7 = vld [vmem:[#allocation12_spill] sm:$0xff] }
 0x391   :  { %972 = vmatpush1.msra.mxu0 %v1837_v8  ;;  %v2581_v8 = vld [vmem:[#allocation13_spill] sm:$0xff] }
 0x392   :  { %973 = vmatprep.subr.mxu0 %v1848_v10  ;;  %v2582_v10 = vld [vmem:[#allocation14_spill] sm:$0xff] }
 0x393   :  { %974 = vmatpush1.msra.mxu0 %v1856_v11  ;;  %v2583_v11 = vld [vmem:[#allocation15_spill] sm:$0xff] }
 0x394   :  { %975 = vmatprep.subr.mxu0 %v1862_v12  ;;  %v2584_v12 = vld [vmem:[#allocation16_spill] sm:$0xff] }
 0x395   :  { %976 = vmatpush1.msra.mxu0 %v1878_v15  ;;  %v2585_v15 = vld [vmem:[#allocation17_spill] sm:$0xff] }
 0x396   :  { %977 = vmatprep.subr.mxu0 %v1895_v18  ;;  %v2586_v18 = vld [vmem:[#allocation18_spill] sm:$0xff] }
 0x397   :  { %978 = vmatpush1.msra.mxu0 %v1907_v20  ;;  %v2587_v20 = vld [vmem:[#allocation19_spill] sm:$0xff] }
 0x398   :  { %979 = vmatprep.subr.mxu0 %v2578_v5 }
 0x399   :  { %980 = vmatpush1.msra.mxu0 %v2579_v6 }
 0x39a   :  { %1365 = vmatmul.mubr.msk.f32.vlgmr.msra.gmra.mxu0 %vm146_vm1, %v2385_v3  ;;  %1613 = vmatprep.subr.mxu0 %v2559_v55 }
 0x39b   :  { %1614 = vmatpush3.msra.mxu0 %v2580_v7  ;;  %1629 = vmatprep.mubr.msk.f32.mxu0 %vm1716_vm2, %v2559_v55 }
 0x39c   :  { %1615 = vmatprep.subr.mxu0 %v2559_v55 }
 0x39d   :  { %1616 = vmatpush3.msra.mxu0 %v2581_v8 }
 0x39e   :  { %1617 = vmatprep.subr.mxu0 %v2559_v55 }
 0x39f   :  { %1618 = vmatpush3.msra.mxu0 %v2582_v10 }
 0x3a0   :  { %1619 = vmatprep.subr.mxu0 %v2559_v55 }
 0x3a1   :  { %1620 = vmatpush3.msra.mxu0 %v2583_v11 }
 0x3a2   :  { %1621 = vmatprep.subr.mxu0 %v2559_v55 }
 0x3a3   :  { %1622 = vmatpush3.msra.mxu0 %v2584_v12 }
 0x3a4   :  { %1623 = vmatprep.subr.mxu0 %v2559_v55 }
 0x3a5   :  { %1624 = vmatpush3.msra.mxu0 %v2585_v15 }
 0x3a6   :  { %1625 = vmatprep.subr.mxu0 %v2559_v55 }
 0x3a7   :  { %1626 = vmatpush3.msra.mxu0 %v2586_v18 }
 0x3a8   :  { %1627 = vmatprep.subr.mxu0 %v2559_v55 }
 0x3a9   :  { %1628 = vmatpush3.msra.mxu0 %v2587_v20 }
 0x3aa   :  { %1632 = vmatprep.subr.mxu0 %v2559_v55 }
 0x44a   :  { %v854_v0 = vpop.f32.mrf.mxu0 }
 0x44b   :  { %v855_v31 = vadd.f32 %v2290_v59, %v854_v0 }
 0x44c   :  { %v1601_v13 = vpop.f32.mrf.mxu0 }
 0x44d   :  { %v859_v61 = vand.u32 2147483647, %v855_v31  ;;  %v858_v5 = vmax.f32 %v855_v31, 0.0 }
 0x44f   :  { %v860_v34 = vsub.f32 0.0, %v859_v61 }
 0x451   :  { %v861_v40 = vmul.f32 1.442695, %v860_v34 }
 0x453   :  { %1668 = vpow2.f32 %v861_v40 }
 0x45a   :  { %v1015_v57 = vpop.f32.mrf.mxu0 }
 0x45c   :  { %v1017_v7 = vpop.f32.mrf.mxu0 }
 0x45d   :  { %v1018_v10 = vadd.f32 %v1017_v7, %v2566_v37 }
 0x460   :  { %v1669_v46 = vpop.eup %1668 }
 0x461   :  { %v863_v62 = vadd.f32 1.0, %v1669_v46 }
 0x463   :  { %1670 = vlog2.f32 %v863_v62 }
 0x470   :  { %v1671_v1 = vpop.eup %1670 }
 0x471   :  { %v865_v6 = vmul.f32 0.6931472, %v1671_v1 }
 0x473   :  { %v866_v8 = vadd.f32 %v865_v6, %v858_v5 }
 0x475   :  { %1611 = vmatmul.mubr.msk.f32.vlgmr.msra.gmra.mxu1 %vm389_vm3, %v866_v8 }
 0x476   :  { %1478 = vmatpush3.msra.mxu1 %v1872_v14  ;;  %1084 = vmatprep.mubr.f32.mxu1 %v1018_v10  ;;  %v1016_v14 = vadd.f32 %v1015_v57, %v2567_v43 }
 0x477   :  { %1479 = vmatprep.subr.mxu1 %v1884_v16  ;;  %v2588_v16 = vld [vmem:[#allocation29_spill] sm:$0xff] }
 0x478   :  { %1480 = vmatpush3.msra.mxu1 %v1889_v17  ;;  %v2589_v17 = vld [vmem:[#allocation30_spill] sm:$0xff] }
 0x479   :  { %1481 = vmatprep.subr.mxu1 %v1901_v19 }
 0x47a   :  { %1482 = vmatpush3.msra.mxu1 %v1913_v21  ;;  %v2590_v21 = vld [vmem:[#allocation20_spill] sm:$0xff] }
 0x47b   :  { %1483 = vmatprep.subr.mxu1 %v1925_v23 }
 0x47c   :  { %1484 = vmatpush3.msra.mxu1 %v1937_v25 }
 0x47d   :  { %1485 = vmatprep.subr.mxu1 %v1953_v27 }
 0x47e   :  { %1486 = vmatpush3.msra.mxu1 %v1966_v29  ;;  %v2591_v29 = vld [vmem:[#allocation21_spill] sm:$0xff] }
 0x47f   :  { %1487 = vmatprep.subr.mxu1 %v1974_v30 }
 0x480   :  { %1488 = vmatpush3.msra.mxu1 %v1986_v32  ;;  %v2592_v32 = vld [vmem:[#allocation22_spill] sm:$0xff] }
 0x481   :  { %1489 = vmatprep.subr.mxu1 %v1993_v33 }
 0x482   :  { %1490 = vmatpush3.msra.mxu1 %v2005_v35  ;;  %v2593_v35 = vld [vmem:[#allocation23_spill] sm:$0xff] }
 0x483   :  { %1491 = vmatprep.subr.mxu1 %v2012_v36  ;;  %v2594_v36 = vld [vmem:[#allocation24_spill] sm:$0xff] }
 0x484   :  { %1492 = vmatpush3.msra.mxu1 %v2024_v38  ;;  %v1090_v38 = vstv %s1364_s8 }
 0x485   :  { %1493 = vmatprep.subr.mxu1 %v2031_v39  ;;  %v1091_v39 = vmul.f32 %v1090_v38, %v2200_v63 }
 0x486   :  { %1494 = vmatpush3.msra.mxu1 %v2043_v41 }
 0x487   :  { %1495 = vmatprep.subr.mxu1 %v2050_v42  ;;  %v1096_v41 = vrot.slane %v1091_v39, %v2186_v9 }
 0x488   :  { %1496 = vmatpush3.msra.mxu1 %v2062_v44 }
 0x489   :  { %1497 = vmatprep.subr.mxu1 %v2069_v45 }
 0x48a   :  { %1498 = vmatpush3.msra.mxu1 %v2081_v47 }
 0x48b   :  { %1499 = vmatprep.subr.mxu1 %v2088_v48 }
 0x48c   :  { %1500 = vmatpush3.msra.mxu1 %v2095_v49 }
 0x48d   :  { %1501 = vmatprep.subr.mxu1 %v2102_v50 }
 0x48e   :  { %1502 = vmatpush3.msra.mxu1 %v2110_v51 }
 0x48f   :  { %1503 = vmatprep.subr.mxu1 %v2121_v52 }
 0x490   :  { %1504 = vmatpush3.msra.mxu1 %v2127_v53 }
 0x491   :  { %1505 = vmatprep.subr.mxu1 %v2133_v54 }
 0x492   :  { %1506 = vmatpush3.msra.mxu1 %v2563_v22 }
 0x493   :  { %1507 = vmatprep.subr.mxu1 %v2564_v26 }
 0x494   :  { %1508 = vmatpush3.msra.mxu1 %v2565_v28 }
 0x495   :  { %1085 = vmatmul.mubr.f32.vlgmr.msra.gmra.mxu1 %v1016_v14  ;;  %1643 = vmatprep.subr.mxu1 %v2559_v55 }
 0x496   :  { %1644 = vmatpush3.msra.mxu1 %v2234_v4  ;;  %1651 = vmatprep.mubr.msk.f32.mxu1 %vm1716_vm2, %v2559_v55 }
 0x497   :  { %1645 = vmatprep.subr.mxu1 %v2559_v55 }
 0x498   :  { %1646 = vmatpush3.msra.mxu1 %v2241_v56 }
 0x499   :  { %1647 = vmatprep.subr.mxu1 %v2559_v55 }
 0x49a   :  { %1648 = vmatpush3.msra.mxu1 %v2588_v16 }
 0x49b   :  { %1649 = vmatprep.subr.mxu1 %v2559_v55 }
 0x49c   :  { %1650 = vmatpush3.msra.mxu1 %v2589_v17 }
 0x535   :  { %v936_v19 = vpop.f32.mrf.mxu1 }
 0x536   :  { %v937_v23 = vadd.f32 %v2590_v21, %v936_v19 }
 0x537   :  { %v1612_v25 = vpop.f32.mrf.mxu1 }
 0x538   :  { %v940_v27 = vadd.f32 %v937_v23, %v2385_v3 }
 0x53a   :  { %v941_v30 = vmul.f32 %v940_v27, %v2591_v29 }
 0x53c   :  { %v942_v33 = vadd.f32 %v941_v30, %v2592_v32 }
 0x53e   :  { %944 = vst.msk [vmem:[#allocation5 + $0x4] sm:$0x3] %vm132_vm0, %v942_v33  ;;  %1630 = vmatmul.mubr.msk.f32.vlgmr.msra.gmra.mxu0 %vm146_vm1, %v942_v33 }
 0x53f   :  { %1633 = vmatpush3.msra.mxu0 %v2593_v35  ;;  %1640 = vmatprep.mubr.msk.f32.mxu0 %vm1716_vm2, %v2559_v55 }
 0x540   :  { %1634 = vmatprep.subr.mxu0 %v2559_v55 }
 0x541   :  { %1635 = vmatpush3.msra.mxu0 %v2594_v36 }
 0x542   :  { %1636 = vmatprep.subr.mxu0 %v2559_v55 }
 0x543   :  { %1637 = vmatpush3.msra.mxu0 %v2574_v24 }
 0x544   :  { %1638 = vmatprep.subr.mxu0 %v2559_v55 }
 0x545   :  { %1639 = vmatpush3.msra.mxu0 %v2575_v58 }
 0x5fe   :  { %v1167_v42 = vpop.f32.mrf.mxu0 }
 0x5ff   :  { %v1168_v44 = vadd.f32 %v1167_v42, %v1096_v41 }
 0x600   :  { %v1631_v45 = vpop.f32.mrf.mxu0 }
 0x601   :  { %v1171_v47 = vadd.f32 %v2210_v60, %v1168_v44  ;;  %v1509_v60 = vpop.f32.mrf.mxu1 }
 0x603   :  { %1672 = vtanh.f32 %v1171_v47  ;;  %v1510_v26 = vpop.f32.mrf.mxu1 }
 0x604   :  { %v1511_v28 = vadd.f32 %v1510_v26, %v1509_v60 }
 0x610   :  { %v1673_v48 = vpop.eup %1672 }
 0x611   :  { %1641 = vmatmul.mubr.msk.f32.vlgmr.msra.gmra.mxu0 %vm389_vm3, %v1673_v48 }
 0x6d1   :  { %v1242_v49 = vpop.f32.mrf.mxu0 }
 0x6d2   :  { %v1243_v50 = vadd.f32 %v2290_v59, %v1242_v49  ;;  %v1087_v59 = vadd.f32 %v1511_v28, %v2577_v2 }
 0x6d3   :  { %v1642_v51 = vpop.f32.mrf.mxu0 }
 0x6d4   :  { %v1247_v52 = vand.u32 2147483647, %v1243_v50  ;;  %v1246_v4 = vmax.f32 %v1243_v50, 0.0 }
 0x6d6   :  { %v1248_v53 = vsub.f32 0.0, %v1247_v52 }
 0x6d8   :  { %v1249_v54 = vmul.f32 1.442695, %v1248_v53 }
 0x6da   :  { %1674 = vpow2.f32 %v1249_v54 }
 0x6e7   :  { %v1675_v55 = vpop.eup %1674 }
 0x6e8   :  { %v1251_v63 = vadd.f32 1.0, %v1675_v55 }
 0x6ea   :  { %1676 = vlog2.f32 %v1251_v63 }
 0x6f7   :  { %v1677_v9 = vpop.eup %1676 }
 0x6f8   :  { %v1253_v56 = vmul.f32 0.6931472, %v1677_v9 }
 0x6fa   :  { %v1254_v22 = vadd.f32 %v1253_v56, %v1246_v4 }
 0x6fc   :  { %1652 = vmatmul.mubr.msk.f32.vlgmr.msra.gmra.mxu1 %vm389_vm3, %v1254_v22 }
 0x7bc   :  { %v1324_v37 = vpop.f32.mrf.mxu1 }
 0x7bd   :  { %v1325_v43 = vadd.f32 %v2590_v21, %v1324_v37 }
 0x7be   :  { %v1653_v24 = vpop.f32.mrf.mxu1 }
 0x7bf   :  { %v1328_v58 = vadd.f32 %v1325_v43, %v1087_v59 }
 0x7c1   :  { %v1329_v3 = vmul.f32 %v1328_v58, %v2591_v29 }
 0x7c3   :  { %v1330_v11 = vadd.f32 %v1329_v3, %v942_v33 }
 0x7c5   :  { %1332 = vst.msk [vmem:[#allocation5 + $0x6] sm:$0x3] %vm132_vm0, %v1330_v11 }
 0x7c6   :  { %1701 = shalt.err (!%p1698_p9)
}
 0x7c7   :  { %s1718_s29 = smov 32   ;;  %s1719_s30 = smov 2  }
 0x7c8   :  { %1344 = dma.vmem_to_hbm [thread:$0]  %s1339_s3, 128, %s2496_s13, [#allocation3], %s1718_s29, %s1718_s29, %s1719_s30  }
 0x7c9   :  { %1712 = dma.done.wait [#allocation3], 128  }
 0x7ca   :  { %1713 = vsyncadd [#allocation3], 4294967168 }
 0x7cb   :  { %1348 = vsyncpa [#allocation3], 1 }
 0x7cc   :  { %1349 = vsyncpa [#allocation4], 1 }

</bundles_post_ra>
